<compile_context>
chip_gen: v5e
topology: v5e:2x2
jax: 0.10.0
libtpu: 0.0.40
codegen_flags: <defaults>
</compile_context>

<pallas_src>
import jax
import jax.numpy as jnp
from jax.experimental import pallas as pl
from jax.experimental.pallas import tpu as pltpu


def _round_up(x, m):
    return (x + m - 1) // m * m


def make_cnn_kernel(k_max, TB, Lp, D, Co_pad, compute_dtype):
    """Fused conv(all branches) + bias/mask + ReLU + time-max + FC kernel."""
    TBLp = TB * Lp

    def kernel(x_ref, w_ref, m_ref, fc_ref, bfc_ref, out_ref, xs_ref):
        # Stage the activation tile into a scratch with a zeroed tail so every
        # tap k can read a full (TBLp, D) slice starting at sublane offset k.
        xs_ref[:TBLp, :] = x_ref[...]
        xs_ref[TBLp:, :] = jnp.zeros((xs_ref.shape[0] - TBLp, D), compute_dtype)

        # Fused all-branch convolution: one (TBLp, D) @ (D, Co_pad) MXU matmul
        # per tap, accumulated in f32.
        acc = jnp.dot(x_ref[...], w_ref[0], preferred_element_type=jnp.float32)
        for k in range(1, k_max):
            acc = acc + jnp.dot(xs_ref[pl.ds(k, TBLp), :], w_ref[k],
                                preferred_element_type=jnp.float32)

        # Bias + invalid-time mask in one add (hoisted host-side): rows with
        # t >= L_out(column) hold -1e30, so ReLU clamps them to 0; ReLU output
        # is >= 0, hence the time-max equals max_pool1d over valid positions.
        act = jnp.maximum(acc.reshape(TB, Lp, Co_pad) + m_ref[...][None, :, :],
                          0.0)
        pooled = jnp.max(act, axis=1)                        # (TB, Co_pad) f32

        # Per-branch FC slices are already concatenated host-side (rows beyond
        # the real channels are zero), so one lane-dense matmul gives logits.
        out_ref[...] = jnp.dot(pooled.astype(compute_dtype), fc_ref[...],
                               preferred_element_type=jnp.float32) + bfc_ref[...]

    return kernel


def cnn1_forward(tokens, embed, conv_ws, conv_bs, wfc, bfc, Ks,
                 block_b=128, compute_dtype=jnp.bfloat16):
    """Fused CNN1 forward (eval mode).

    tokens     : (N, L) int32
    embed      : (V, D) f32
    conv_ws[i] : (K_i, D, Co) f32  == PyTorch Conv2d weight (Co,1,K,D) permuted
    conv_bs[i] : (1, Co) f32
    wfc        : (len(Ks)*Co, C) f32  == PyTorch Linear weight transposed
    bfc        : (1, C) f32
    returns logits (N, C) f32.

    block_b: batch rows per grid step (128 default; ~64 on v5e if VMEM-tight,
      256+ on v6e/v7x for large batches).  It is capped so the grid has >= 2
      blocks whenever the batch allows, so both v7x TensorCores get work.
    compute_dtype: bfloat16 (default, full MXU rate) or float32.
    """
    N, L = tokens.shape
    V, D = embed.shape
    Co = conv_ws[0].shape[-1]
    C = wfc.shape[1]
    n_k = len(Ks)
    k_max = max(Ks)
    assert L >= k_max, "sequence shorter than the largest conv kernel"

    # ---- one-time host-side weight massaging (all tiny) ----
    Co_tot = n_k * Co
    Co_pad = _round_up(max(Co_tot, 128), 128)        # lane-dense conv channels
    C_pad = _round_up(max(C, 128), 128)              # lane-dense logits slab
    Lp = _round_up(L, 8)                             # sublane-aligned seq length
    L_outs = [L - K + 1 for K in Ks]                 # true pooling lengths

    # Fused conv weight (k_max, D, Co_pad): branch i -> cols [i*Co, (i+1)*Co),
    # taps k >= K_i stay zero.
    w_big = jnp.zeros((k_max, D, Co_pad), jnp.float32)
    for i, (K, w) in enumerate(zip(Ks, conv_ws)):
        w_big = w_big.at[:K, :, i * Co:(i + 1) * Co].set(w.astype(jnp.float32))
    w_big = w_big.astype(compute_dtype)

    # Bias + time-validity mask folded into one (Lp, Co_pad) f32 pre-ReLU add.
    thr = jnp.zeros((Co_pad,), jnp.int32)
    bias_row = jnp.zeros((Co_pad,), jnp.float32)
    for i, (L_out, b) in enumerate(zip(L_outs, conv_bs)):
        thr = thr.at[i * Co:(i + 1) * Co].set(L_out)
        bias_row = bias_row.at[i * Co:(i + 1) * Co].set(
            jnp.reshape(b, (-1,)).astype(jnp.float32))
    t_idx = jnp.arange(Lp, dtype=jnp.int32)[:, None]              # (Lp, 1)
    bias_mask = jnp.where(t_idx < thr[None, :], bias_row[None, :],
                          jnp.float32(-1e30))                     # (Lp, Co_pad)

    # FC weight/bias, zero-padded to lane-dense shapes, cast once host-side.
    wfc_pad = (jnp.zeros((Co_pad, C_pad), jnp.float32)
               .at[:Co_tot, :C].set(wfc.astype(jnp.float32))
               .astype(compute_dtype))
    bfc_pad = (jnp.zeros((1, C_pad), jnp.float32)
               .at[:, :C].set(jnp.reshape(bfc, (1, -1)).astype(jnp.float32)))

    # ---- batch tiling ----
    n8 = _round_up(N, 8)
    TB = min(_round_up(block_b, 8), n8)
    if n8 >= 16:                                     # >= 2 grid blocks (v7x: 2 TCs)
        TB = min(TB, _round_up((n8 + 1) // 2, 8))
    N_pad = _round_up(N, TB)
    grid = (N_pad // TB,)
    TBLp = TB * Lp
    pad_rows = _round_up(max(k_max - 1, 1), 8)       # scratch tail for tap shifts

    tok = tokens
    if (N_pad, Lp) != (N, L):
        tok = jnp.pad(tokens, ((0, N_pad - N), (0, Lp - L)))  # pad ids read row 0

    # Embedding gather in XLA (straight from the HBM table -> scales to any V);
    # cast once to the MXU input dtype.
    x = jnp.take(embed, tok.reshape(-1), axis=0).astype(compute_dtype)  # (N_pad*Lp, D)

    kernel = make_cnn_kernel(k_max, TB, Lp, D, Co_pad, compute_dtype)

    out = pl.pallas_call(
        kernel,
        out_shape=jax.ShapeDtypeStruct((N_pad, C_pad), jnp.float32),
        grid=grid,
        in_specs=[
            pl.BlockSpec((TBLp, D), lambda i: (i, 0)),        # activation tile
            # Grid-invariant weights (constant index_map -> fetched once; all
            # tiny, ~100 KB total, so buffering cost is immaterial).
            pl.BlockSpec(w_big.shape, lambda i: (0, 0, 0)),
            pl.BlockSpec(bias_mask.shape, lambda i: (0, 0)),
            pl.BlockSpec(wfc_pad.shape, lambda i: (0, 0)),
            pl.BlockSpec(bfc_pad.shape, lambda i: (0, 0)),
        ],
        out_specs=pl.BlockSpec((TB, C_pad), lambda i: (i, 0)),
        scratch_shapes=[pltpu.VMEM((TBLp + pad_rows, D), compute_dtype)],
        compiler_params=pltpu.CompilerParams(
            dimension_semantics=("parallel",),
            vmem_limit_bytes=32 * 1024 * 1024),
    )(x, w_big, bias_mask, wfc_pad, bfc_pad)
    return out[:N, :C]


def cnn1_reference(tokens, embed, conv_ws, conv_bs, wfc, bfc, Ks):
    """Pure-JAX reference mirroring the PyTorch forward (eval mode)."""
    x = jnp.take(embed, tokens, axis=0).astype(jnp.float32)  # (N, L, D)
    L = x.shape[1]
    feats = []
    for K, w, b in zip(Ks, conv_ws, conv_bs):
        L_out = L - K + 1
        acc = sum(
            jnp.einsum('nld,dc->nlc', x[:, k:k + L_out, :], w[k],
                       precision=jax.lax.Precision.HIGHEST)
            for k in range(K)
        ) + b                                     # (N, L_out, Co)
        acc = jnp.maximum(acc, 0.0)
        feats.append(jnp.max(acc, axis=1))        # (N, Co)
    feat = jnp.concatenate(feats, axis=1)         # (N, len(Ks)*Co)
    return jnp.dot(feat, wfc, precision=jax.lax.Precision.HIGHEST) + bfc


if __name__ == "__main__":
    # Small config consistent with CNN1's __init__ (opt.*):
    V = 50          # vocab_size
    D = 32          # embedding_dim
    C = 4           # label_size
    Co = 8          # kernel_num
    Ks = (3, 4, 5)  # kernel_sizes
    N = 2           # batch
    L = 16          # sequence length

    key = jax.random.PRNGKey(0)
    keys = jax.random.split(key, 4 + 2 * len(Ks))

    embed = 0.1 * jax.random.normal(keys[0], (V, D), jnp.float32)
    conv_ws = [0.1 * jax.random.normal(keys[1 + i], (K, D, Co), jnp.float32)
               for i, K in enumerate(Ks)]
    conv_bs = [0.1 * jax.random.normal(keys[1 + len(Ks) + i], (1, Co), jnp.float32)
               for i in range(len(Ks))]
    wfc = 0.1 * jax.random.normal(keys[1 + 2 * len(Ks)], (len(Ks) * Co, C), jnp.float32)
    bfc = 0.1 * jax.random.normal(keys[2 + 2 * len(Ks)], (1, C), jnp.float32)
    tokens = jax.random.randint(keys[3 + 2 * len(Ks)], (N, L), 0, V, dtype=jnp.int32)

    ref = jax.block_until_ready(
        cnn1_reference(tokens, embed, conv_ws, conv_bs, wfc, bfc, Ks))

    # f32 compute path: matches the f32 reference tightly.
    out_f32 = jax.block_until_ready(
        cnn1_forward(tokens, embed, conv_ws, conv_bs, wfc, bfc, Ks,
                     compute_dtype=jnp.float32))
    assert out_f32.shape == (N, C), out_f32.shape
    assert jnp.allclose(out_f32, ref, atol=1e-4, rtol=1e-4), (out_f32, ref)

    # Default bf16 compute path (full MXU rate): loose tolerance vs f32 ref.
    out_bf16 = jax.block_until_ready(
        cnn1_forward(tokens, embed, conv_ws, conv_bs, wfc, bfc, Ks))
    assert jnp.allclose(out_bf16, ref, atol=2e-2, rtol=2e-2), (out_bf16, ref)

    # Multi-block grids: default block_b (>=2-block cap path, grid=2) and a
    # tiny block_b=8 (grid=3), both exercising batch padding.
    tokens_big = jax.random.randint(jax.random.PRNGKey(1), (20, L), 0, V,
                                    dtype=jnp.int32)
    ref_big = cnn1_reference(tokens_big, embed, conv_ws, conv_bs, wfc, bfc, Ks)
    for bb in (128, 8):
        out_big = jax.block_until_ready(
            cnn1_forward(tokens_big, embed, conv_ws, conv_bs, wfc, bfc, Ks,
                         block_b=bb))
        assert jnp.allclose(out_big, ref_big, atol=2e-2, rtol=2e-2), bb

    print("KERNEL_OK")
</pallas_src>

<mosaic_0001>
module attributes {stable_mosaic.version = 11 : i64} {
  func.func @kernel(%arg0: i32, %arg1: memref<128x32xf32, #tpu.memory_space<vmem>>, %arg2: memref<5x32x128xf32, #tpu.memory_space<vmem>>, %arg3: memref<16x128xf32, #tpu.memory_space<vmem>>, %arg4: memref<128x128xf32, #tpu.memory_space<vmem>>, %arg5: memref<1x128xf32, #tpu.memory_space<vmem>>, %arg6: memref<8x128xf32, #tpu.memory_space<vmem>>, %arg7: memref<136x32xf32, #tpu.memory_space<vmem>>) attributes {dimension_semantics = [#tpu.dimension_semantics<parallel>], iteration_bounds = array<i64: 1>, scalar_prefetch = 0 : i64, scratch_operands = 1 : i64, tpu.core_type = #tpu.core_type<tc>, window_params = [{transform_indices = @transform_0, window_bounds = array<i64: 128, 32>}, {pipeline_mode = #tpu.pipeline_mode<synchronous>, transform_indices = @transform_1, window_bounds = array<i64: 5, 32, 128>}, {pipeline_mode = #tpu.pipeline_mode<synchronous>, transform_indices = @transform_2, window_bounds = array<i64: 16, 128>}, {pipeline_mode = #tpu.pipeline_mode<synchronous>, transform_indices = @transform_3, window_bounds = array<i64: 128, 128>}, {pipeline_mode = #tpu.pipeline_mode<synchronous>, transform_indices = @transform_4, window_bounds = array<i64: 1, 128>}, {transform_indices = @transform_5, window_bounds = array<i64: 8, 128>}]} {
    %c0 = arith.constant 0 : index
    %c0_0 = arith.constant 0 : index
    %0 = vector.load %arg1[%c0, %c0_0] : memref<128x32xf32, #tpu.memory_space<vmem>>, vector<128x32xf32>
    %c0_1 = arith.constant 0 : index
    %c0_2 = arith.constant 0 : index
    %1 = vector.load %arg7[%c0_1, %c0_2] : memref<136x32xf32, #tpu.memory_space<vmem>>, vector<128x32xf32>
    tpu.vector_store %arg7[%c0_1, %c0_2], %0 {strides = array<i32>} : memref<136x32xf32, #tpu.memory_space<vmem>>, vector<128x32xf32>,
    %cst = arith.constant 0.000000e+00 : f32
    %2 = vector.broadcast %cst : f32 to vector<8x32xf32>
    %c128 = arith.constant 128 : index
    %c0_3 = arith.constant 0 : index
    %3 = vector.load %arg7[%c128, %c0_3] : memref<136x32xf32, #tpu.memory_space<vmem>>, vector<8x32xf32>
    tpu.vector_store %arg7[%c128, %c0_3], %2 {strides = array<i32>} : memref<136x32xf32, #tpu.memory_space<vmem>>, vector<8x32xf32>,
    %c0_4 = arith.constant 0 : index
    %c0_5 = arith.constant 0 : index
    %4 = vector.load %arg1[%c0_4, %c0_5] : memref<128x32xf32, #tpu.memory_space<vmem>>, vector<128x32xf32>
    %c0_6 = arith.constant 0 : index
    %c0_7 = arith.constant 0 : index
    %c0_8 = arith.constant 0 : index
    %5 = vector.load %arg2[%c0_6, %c0_7, %c0_8] : memref<5x32x128xf32, #tpu.memory_space<vmem>>, vector<1x32x128xf32>
    %6 = vector.shape_cast %5 : vector<1x32x128xf32> to vector<32x128xf32>
    %cst_9 = arith.constant dense<0.000000e+00> : vector<128x128xf32>
    %7 = tpu.matmul %4, %6, %cst_9 {dimension_numbers = #tpu.dot_dimension_numbers<[1], [0], [0], [1], [0, 0, 1, 1], [], []>} : vector<128x32xf32>, vector<32x128xf32>, vector<128x128xf32> -> vector<128x128xf32>
    %c1 = arith.constant 1 : index
    %c0_10 = arith.constant 0 : index
    %8 = vector.load %arg7[%c1, %c0_10] : memref<136x32xf32, #tpu.memory_space<vmem>>, vector<128x32xf32>
    %c1_11 = arith.constant 1 : index
    %c0_12 = arith.constant 0 : index
    %c0_13 = arith.constant 0 : index
    %9 = vector.load %arg2[%c1_11, %c0_12, %c0_13] : memref<5x32x128xf32, #tpu.memory_space<vmem>>, vector<1x32x128xf32>
    %10 = vector.shape_cast %9 : vector<1x32x128xf32> to vector<32x128xf32>
    %cst_14 = arith.constant dense<0.000000e+00> : vector<128x128xf32>
    %11 = tpu.matmul %8, %10, %cst_14 {dimension_numbers = #tpu.dot_dimension_numbers<[1], [0], [0], [1], [0, 0, 1, 1], [], []>} : vector<128x32xf32>, vector<32x128xf32>, vector<128x128xf32> -> vector<128x128xf32>
    %12 = arith.addf %7, %11 : vector<128x128xf32>
    %c2 = arith.constant 2 : index
    %c0_15 = arith.constant 0 : index
    %13 = vector.load %arg7[%c2, %c0_15] : memref<136x32xf32, #tpu.memory_space<vmem>>, vector<128x32xf32>
    %c2_16 = arith.constant 2 : index
    %c0_17 = arith.constant 0 : index
    %c0_18 = arith.constant 0 : index
    %14 = vector.load %arg2[%c2_16, %c0_17, %c0_18] : memref<5x32x128xf32, #tpu.memory_space<vmem>>, vector<1x32x128xf32>
    %15 = vector.shape_cast %14 : vector<1x32x128xf32> to vector<32x128xf32>
    %cst_19 = arith.constant dense<0.000000e+00> : vector<128x128xf32>
    %16 = tpu.matmul %13, %15, %cst_19 {dimension_numbers = #tpu.dot_dimension_numbers<[1], [0], [0], [1], [0, 0, 1, 1], [], []>} : vector<128x32xf32>, vector<32x128xf32>, vector<128x128xf32> -> vector<128x128xf32>
    %17 = arith.addf %12, %16 : vector<128x128xf32>
    %c3 = arith.constant 3 : index
    %c0_20 = arith.constant 0 : index
    %18 = vector.load %arg7[%c3, %c0_20] : memref<136x32xf32, #tpu.memory_space<vmem>>, vector<128x32xf32>
    %c3_21 = arith.constant 3 : index
    %c0_22 = arith.constant 0 : index
    %c0_23 = arith.constant 0 : index
    %19 = vector.load %arg2[%c3_21, %c0_22, %c0_23] : memref<5x32x128xf32, #tpu.memory_space<vmem>>, vector<1x32x128xf32>
    %20 = vector.shape_cast %19 : vector<1x32x128xf32> to vector<32x128xf32>
    %cst_24 = arith.constant dense<0.000000e+00> : vector<128x128xf32>
    %21 = tpu.matmul %18, %20, %cst_24 {dimension_numbers = #tpu.dot_dimension_numbers<[1], [0], [0], [1], [0, 0, 1, 1], [], []>} : vector<128x32xf32>, vector<32x128xf32>, vector<128x128xf32> -> vector<128x128xf32>
    %22 = arith.addf %17, %21 : vector<128x128xf32>
    %c4 = arith.constant 4 : index
    %c0_25 = arith.constant 0 : index
    %23 = vector.load %arg7[%c4, %c0_25] : memref<136x32xf32, #tpu.memory_space<vmem>>, vector<128x32xf32>
    %c4_26 = arith.constant 4 : index
    %c0_27 = arith.constant 0 : index
    %c0_28 = arith.constant 0 : index
    %24 = vector.load %arg2[%c4_26, %c0_27, %c0_28] : memref<5x32x128xf32, #tpu.memory_space<vmem>>, vector<1x32x128xf32>
    %25 = vector.shape_cast %24 : vector<1x32x128xf32> to vector<32x128xf32>
    %cst_29 = arith.constant dense<0.000000e+00> : vector<128x128xf32>
    %26 = tpu.matmul %23, %25, %cst_29 {dimension_numbers = #tpu.dot_dimension_numbers<[1], [0], [0], [1], [0, 0, 1, 1], [], []>} : vector<128x32xf32>, vector<32x128xf32>, vector<128x128xf32> -> vector<128x128xf32>
    %27 = arith.addf %22, %26 : vector<128x128xf32>
    %28 = vector.shape_cast %27 : vector<128x128xf32> to vector<8x16x128xf32>
    %c0_30 = arith.constant 0 : index
    %c0_31 = arith.constant 0 : index
    %29 = vector.load %arg3[%c0_30, %c0_31] : memref<16x128xf32, #tpu.memory_space<vmem>>, vector<16x128xf32>
    %30 = vector.shape_cast %29 : vector<16x128xf32> to vector<1x16x128xf32>
    %31 = vector.broadcast %30 : vector<1x16x128xf32> to vector<8x16x128xf32>
    %32 = arith.addf %28, %31 : vector<8x16x128xf32>
    %cst_32 = arith.constant 0.000000e+00 : f32
    %33 = vector.broadcast %cst_32 : f32 to vector<8x16x128xf32>
    %34 = arith.maximumf %32, %33 : vector<8x16x128xf32>
    %cst_33 = arith.constant dense<0xFF800000> : vector<8x128xf32>
    %35 = vector.multi_reduction <maximumf>, %34, %cst_33 [1] : vector<8x16x128xf32> to vector<8x128xf32>
    %c0_34 = arith.constant 0 : index
    %c0_35 = arith.constant 0 : index
    %36 = vector.load %arg4[%c0_34, %c0_35] : memref<128x128xf32, #tpu.memory_space<vmem>>, vector<128x128xf32>
    %cst_36 = arith.constant dense<0.000000e+00> : vector<8x128xf32>
    %37 = tpu.matmul %35, %36, %cst_36 {dimension_numbers = #tpu.dot_dimension_numbers<[1], [0], [0], [1], [0, 0, 1, 1], [], []>} : vector<8x128xf32>, vector<128x128xf32>, vector<8x128xf32> -> vector<8x128xf32>
    %c0_37 = arith.constant 0 : index
    %c0_38 = arith.constant 0 : index
    %38 = vector.load %arg5[%c0_37, %c0_38] : memref<1x128xf32, #tpu.memory_space<vmem>>, vector<1x128xf32>
    %39 = vector.broadcast %38 : vector<1x128xf32> to vector<8x128xf32>
    %40 = arith.addf %37, %39 : vector<8x128xf32>
    %c0_39 = arith.constant 0 : index
    %c0_40 = arith.constant 0 : index
    %41 = vector.load %arg6[%c0_39, %c0_40] : memref<8x128xf32, #tpu.memory_space<vmem>>, vector<8x128xf32>
    tpu.vector_store %arg6[%c0_39, %c0_40], %40 {strides = array<i32>} : memref<8x128xf32, #tpu.memory_space<vmem>>, vector<8x128xf32>,
    return
  }
  func.func @transform_0(%arg0: i32) -> (i32, i32) {
    %c0_i32 = arith.constant 0 : i32
    %c0_i32_0 = arith.constant 0 : i32
    return %arg0, %c0_i32 : i32, i32
  }
  func.func @transform_1(%arg0: i32) -> (i32, i32, i32) {
    %c0_i32 = arith.constant 0 : i32
    %c0_i32_0 = arith.constant 0 : i32
    %c0_i32_1 = arith.constant 0 : i32
    %c0_i32_2 = arith.constant 0 : i32
    return %c0_i32, %c0_i32_0, %c0_i32_1 : i32, i32, i32
  }
  func.func @transform_2(%arg0: i32) -> (i32, i32) {
    %c0_i32 = arith.constant 0 : i32
    %c0_i32_0 = arith.constant 0 : i32
    %c0_i32_1 = arith.constant 0 : i32
    return %c0_i32, %c0_i32_0 : i32, i32
  }
  func.func @transform_3(%arg0: i32) -> (i32, i32) {
    %c0_i32 = arith.constant 0 : i32
    %c0_i32_0 = arith.constant 0 : i32
    %c0_i32_1 = arith.constant 0 : i32
    return %c0_i32, %c0_i32_0 : i32, i32
  }
  func.func @transform_4(%arg0: i32) -> (i32, i32) {
    %c0_i32 = arith.constant 0 : i32
    %c0_i32_0 = arith.constant 0 : i32
    %c0_i32_1 = arith.constant 0 : i32
    return %c0_i32, %c0_i32_0 : i32, i32
  }
  func.func @transform_5(%arg0: i32) -> (i32, i32) {
    %c0_i32 = arith.constant 0 : i32
    %c0_i32_0 = arith.constant 0 : i32
    return %arg0, %c0_i32 : i32, i32
  }
}

</mosaic_0001>

<bundles_post_ra>
// kernel: tpu_custom_call.1
= control target key start
LH: loop header
LB: loop body
LE: loop exit
PB: predicated region body
PF: predicated region fallthrough
CT: control target
= control target key end

     0   :  { %10 = vsyncpa [#allocation4], 0  ;;  %s1530_s0 = inlined_call_operand.vmem [shape: f32[128,32], index: 0, kind: input, shape index: {}]   ;;  %s1531_s1 = inlined_call_operand.vmem [shape: f32[5,32,128], index: 1, kind: input, shape index: {}]   ;;  %s1532_s2 = inlined_call_operand.hbm [shape: f32[16,128], index: 2, kind: input, shape index: {}]   ;;  %s1533_s3 = inlined_call_operand.hbm [shape: f32[128,128], index: 3, kind: input, shape index: {}]   ;;  %s1534_s4 = inlined_call_operand.vmem [shape: f32[1,128], index: 4, kind: input, shape index: {}]   ;;  %s1535_s5 = inlined_call_operand.hbm [shape: f32[8,128], index: 5, kind: output, shape index: {}]  }
   0x1   :  { %11 = vsyncpa [#allocation7], 0 }
   0x2   :  { %12 = vsyncpa [#allocation5], 0  ;;  %s21_s20 = sshll.u32 %s1532_s2, 4  ;;  %s1169_s21 = smov [#allocation3]   ;;  %s22_s20 = int_to_ptr.hbm [resolvable:$true] %s21_s20 }
   0x3   :  { %s23_s22 = sshll.u32 %s1169_s21, 4  ;;  %s34_s25 = sshll.u32 %s1533_s3, 4  ;;  %s24_s22 = int_to_ptr.vmem [resolvable:$true] %s23_s22  ;;  %s35_s25 = int_to_ptr.hbm [resolvable:$true] %s34_s25 }
   0x4   :  { %s1170_s26 = smov 128   ;;  %s1171_s27 = smov 8  }
   0x5   :  { %29 = dma.hbm_to_vmem [thread:$0]  %s22_s20, 256, %s24_s22, [#allocation4], %s1170_s26, %s1170_s26, %s1171_s27  }
   0x6   :  { %s1172_s28 = smov [#allocation6]  }
   0x7   :  { %s36_s29 = sshll.u32 %s1172_s28, 4  ;;  %s37_s29 = int_to_ptr.vmem [resolvable:$true] %s36_s29 }
   0x8   :  { %42 = dma.hbm_to_vmem [thread:$0]  %s35_s25, 2048, %s37_s29, [#allocation7], %s1170_s26, %s1170_s26, %s1171_s27  }
   0x9   :  { %1163 = dma.done.wait [#allocation4], 256  }
   0xa   :  { %1164 = vsyncadd [#allocation4], 4294967040 }
   0xb   :  { %1165 = dma.done.wait [#allocation7], 2048  }
   0xc   :  { %1166 = vsyncadd [#allocation7], 4294965248  ;;  %vm69_vm0 = vcmask 261120   ;;  %v979_v0 = vld [vmem:[%s1531_s1 + $0x38] sm:$0xff]  ;;  %v978_v1 = vld [vmem:[%s1531_s1 + $0x30] sm:$0xff]  ;;  %v1173_v40 = vmov 0.0  }
   0xd   :  { %1072 = vmatpush.msra.mxu1 %v979_v0  ;;  %1073 = vmatpush.msra.mxu2 %v979_v0  ;;  %v1220_v2 = vld [vmem:[%s1530_s0 + $0x28] sm:$0xff]  ;;  %v1225_v3 = vld [vmem:[%s1530_s0 + $0x30] sm:$0xff]  ;;  %v1235_v5 = vld [vmem:[%s1530_s0 + $0x38] sm:$0xff]  ;;  %86 = vst.msk [vmem:[#allocation2 + $0x80] sm:$0xff] %vm69_vm0, %v1173_v40  ;;  %vm922_vm1 = vcmask 1041409   ;;  %vm924_vm2 = vcmask 1042434  }
   0xe   :  { %1074 = vmatpush.msra.mxu3 %v979_v0  ;;  %v977_v4 = vld [vmem:[%s1531_s1 + $0x28] sm:$0xff]  ;;  %75 = vst.msk [vmem:[#allocation2 + $0x28] sm:$0xff] %vm69_vm0, %v1220_v2  ;;  %188 = vmatpush.msra.mxu0 %v979_v0  ;;  %v1242_v6 = vld [vmem:[%s1530_s0 + $0x58] sm:$0xff]  ;;  %v1247_v7 = vld [vmem:[%s1530_s0 + $0x60] sm:$0xff]  ;;  %vm926_vm3 = vcmask 1043459   ;;  %vm928_vm4 = vcmask 1044484  }
   0xf   :  { %1075 = vmatpush.msra.mxu1 %v978_v1  ;;  %1076 = vmatpush.msra.mxu2 %v978_v1  ;;  %76 = vst.msk [vmem:[#allocation2 + $0x30] sm:$0xff] %vm69_vm0, %v1225_v3  ;;  %v976_v8 = vld [vmem:[%s1531_s1 + $0x20] sm:$0xff]  ;;  %v1015_v9 = vld [vmem:[%s1531_s1 + $0x58] sm:$0xff]  ;;  %v1280_v14 = vld [vmem:[%s1530_s0 + $0x8] sm:$0xff]  ;;  %vm930_vm5 = vcmask 1045509   ;;  %vm932_vm6 = vcmask 1046534  }
  0x10   :  { %1077 = vmatpush.msra.mxu3 %v978_v1  ;;  %77 = vst.msk [vmem:[#allocation2 + $0x38] sm:$0xff] %vm69_vm0, %v1235_v5  ;;  %189 = vmatpush.msra.mxu0 %v978_v1  ;;  %v1262_v10 = vld [vmem:[%s1530_s0 + $0x40] sm:$0xff]  ;;  %v106_v12 = vld [vmem:[%s1531_s1 + $0x18] sm:$0xff]  ;;  %v1287_v15 = vld [vmem:[%s1530_s0 + $0x68] sm:$0xff]  ;;  %vm934_vm7 = vcmask 1047559   ;;  %s1174_s21 = smov [#allocation8]  }
  0x11   :  { %1078 = vmatpush.msra.mxu1 %v977_v4  ;;  %1079 = vmatpush.msra.mxu2 %v977_v4  ;;  %81 = vst.msk [vmem:[#allocation2 + $0x58] sm:$0xff] %vm69_vm0, %v1242_v6  ;;  %v1267_v11 = vld [vmem:[%s1530_s0] sm:$0xff]  ;;  %v1035_v13 = vld [vmem:[%s1531_s1 + $0x78] sm:$0xff]  ;;  %v1014_v16 = vld [vmem:[%s1531_s1 + $0x50] sm:$0xff]  ;;  %s963_s22 = sshll.u32 %s1174_s21, 4  ;;  %s965_s25 = sshll.u32 %s1535_s5, 4  ;;  %s964_s22 = int_to_ptr.vmem [resolvable:$true] %s963_s22  ;;  %s966_s25 = int_to_ptr.hbm [resolvable:$true] %s965_s25 }
  0x12   :  { %1080 = vmatpush.msra.mxu3 %v977_v4  ;;  %82 = vst.msk [vmem:[#allocation2 + $0x60] sm:$0xff] %vm69_vm0, %v1247_v7  ;;  %190 = vmatpush.msra.mxu0 %v977_v4  ;;  %v105_v17 = vld [vmem:[%s1531_s1 + $0x10] sm:$0xff]  ;;  %v1055_v18 = vld [vmem:[%s1531_s1 + $0x98] sm:$0xff]  ;;  %v1303_v19 = vld [vmem:[%s1530_s0 + $0x48] sm:$0xff] }
  0x13   :  { %1081 = vmatpush.msra.mxu1 %v976_v8  ;;  %1082 = vmatpush.msra.mxu2 %v976_v8  ;;  %78 = vst.msk [vmem:[#allocation2 + $0x40] sm:$0xff] %vm69_vm0, %v1262_v10  ;;  %v104_v20 = vld [vmem:[%s1531_s1 + $0x8] sm:$0xff]  ;;  %v1034_v21 = vld [vmem:[%s1531_s1 + $0x70] sm:$0xff]  ;;  %v103_v27 = vld [vmem:[%s1531_s1] sm:$0xff] }
  0x14   :  { %1083 = vmatpush.msra.mxu3 %v976_v8  ;;  %70 = vst.msk [vmem:[#allocation2] sm:$0xff] %vm69_vm0, %v1267_v11  ;;  %v55_v22 = vld [vmem:[%s1530_s0 + $0x10] sm:$0xff]  ;;  %191 = vmatpush.msra.mxu0 %v976_v8  ;;  %v1013_v25 = vld [vmem:[%s1531_s1 + $0x48] sm:$0xff]  ;;  %v56_v31 = vld [vmem:[%s1530_s0 + $0x18] sm:$0xff] }
  0x15   :  { %435 = vmatpush.msrb.mxu2 %v1015_v9  ;;  %301 = vmatpush.msrb.mxu1 %v106_v12  ;;  %71 = vst.msk [vmem:[#allocation2 + $0x8] sm:$0xff] %vm69_vm0, %v1280_v14  ;;  %v1321_v24 = vld [vmem:[%s1530_s0 + $0x70] sm:$0xff]  ;;  %v1033_v30 = vld [vmem:[%s1531_s1 + $0x68] sm:$0xff]  ;;  %v1353_v33 = vld [vmem:[%s1530_s0 + $0x78] sm:$0xff] }
  0x16   :  { %585 = vmatpush.msrb.mxu3 %v1035_v13  ;;  %v112_v23 = vld [vmem:[#allocation2 + $0x29] sm:$0xff]  ;;  %83 = vst.msk [vmem:[#allocation2 + $0x68] sm:$0xff] %vm69_vm0, %v1287_v15  ;;  %735 = vmatpush.msrb.mxu0 %v1055_v18  ;;  %v1012_v34 = vld [vmem:[%s1531_s1 + $0x40] sm:$0xff] }
  0x17   :  { %436 = vmatpush.msrb.mxu2 %v1014_v16  ;;  %985 = vmatmul.msk.f32.vlgmr.msra.gmra.mxu1 %vm69_vm0, %v112_v23  ;;  %v113_v26 = vld [vmem:[#allocation2 + $0x31] sm:$0xff]  ;;  %79 = vst.msk [vmem:[#allocation2 + $0x48] sm:$0xff] %vm69_vm0, %v1303_v19  ;;  %v1032_v35 = vld [vmem:[%s1531_s1 + $0x60] sm:$0xff]  ;;  %v1053_v37 = vld [vmem:[%s1531_s1 + $0x88] sm:$0xff] }
  0x18   :  { %v1054_v28 = vld [vmem:[%s1531_s1 + $0x90] sm:$0xff]  ;;  %986 = vmatmul.msk.f32.vlgmr.msra.gmra.mxu2 %vm69_vm0, %v113_v26  ;;  %302 = vmatpush.msrb.mxu1 %v105_v17  ;;  %72 = vst.msk [vmem:[#allocation2 + $0x10] sm:$0xff] %vm69_vm0, %v55_v22  ;;  %v57_v36 = vld [vmem:[%s1530_s0 + $0x20] sm:$0xff] }
  0x19   :  { %v1338_v29 = vld [vmem:[%s1530_s0 + $0x50] sm:$0xff]  ;;  %v118_v32 = vld [vmem:[#allocation2 + $0x59] sm:$0xff]  ;;  %586 = vmatpush.msrb.mxu3 %v1034_v21  ;;  %84 = vst.msk [vmem:[#allocation2 + $0x70] sm:$0xff] %vm69_vm0, %v1321_v24  ;;  %437 = vmatpush.msrb.mxu2 %v1013_v25 }
  0x1a   :  { %991 = vmatmul.msk.f32.vlgmr.msra.gmra.mxu3 %vm69_vm0, %v118_v32  ;;  %303 = vmatpush.msrb.mxu1 %v104_v20  ;;  %80 = vst.msk [vmem:[#allocation2 + $0x50] sm:$0xff] %vm69_vm0, %v1338_v29  ;;  %v114_v39 = vld [vmem:[#allocation2 + $0x39] sm:$0xff]  ;;  %v359_v4 = vld [vmem:[#allocation2 + $0x2a] sm:$0xff] }
  0x1b   :  { %736 = vmatpush.msrb.mxu0 %v1054_v28  ;;  %587 = vmatpush.msrb.mxu3 %v1033_v30  ;;  %73 = vst.msk [vmem:[#allocation2 + $0x18] sm:$0xff] %vm69_vm0, %v56_v31  ;;  %v1052_v42 = vld [vmem:[%s1531_s1 + $0x80] sm:$0xff]  ;;  %v659_v8 = vld [vmem:[#allocation2 + $0x2c] sm:$0xff] }
  0x1c   :  { %304 = vmatpush.msrb.mxu1 %v103_v27  ;;  %v107_v38 = vld [vmem:[#allocation2 + $0x1] sm:$0xff]  ;;  %85 = vst.msk [vmem:[#allocation2 + $0x78] sm:$0xff] %vm69_vm0, %v1353_v33  ;;  %438 = vmatpush.msrb.mxu2 %v1012_v34  ;;  %v360_v9 = vld [vmem:[#allocation2 + $0x32] sm:$0xff] }
  0x1d   :  { %980 = vmatmul.msk.f32.vlgmr.msra.gmra.mxu0 %vm69_vm0, %v107_v38  ;;  %588 = vmatpush.msrb.mxu3 %v1032_v35  ;;  %74 = vst.msk [vmem:[#allocation2 + $0x20] sm:$0xff] %vm69_vm0, %v57_v36  ;;  %v119_v41 = vld [vmem:[#allocation2 + $0x61] sm:$0xff] }
  0x1e   :  { %737 = vmatpush.msrb.mxu0 %v1053_v37  ;;  %v115_v44 = vld [vmem:[#allocation2 + $0x41] sm:$0xff] }
  0x1f   :  { %996 = vmatmul.msk.f32.vlgmr.msrb.gmra.mxu1 %vm69_vm0, %v1267_v11  ;;  %v108_v43 = vld [vmem:[#allocation2 + $0x9] sm:$0xff]  ;;  %v660_v11 = vld [vmem:[#allocation2 + $0x34] sm:$0xff]  ;;  %v665_v26 = vld [vmem:[#allocation2 + $0x5c] sm:$0xff] }
  0x20   :  { %987 = vmatmul.msk.f32.gmra.mxu2 %vm69_vm0, %v114_v39  ;;  %738 = vmatpush.msrb.mxu0 %v1052_v42  ;;  %v120_v45 = vld [vmem:[#allocation2 + $0x69] sm:$0xff]  ;;  %v361_v12 = vld [vmem:[#allocation2 + $0x3a] sm:$0xff] }
  0x21   :  { %v116_v47 = vld [vmem:[#allocation2 + $0x49] sm:$0xff]  ;;  %v117_v50 = vld [vmem:[#allocation2 + $0x51] sm:$0xff]  ;;  %v511_v13 = vld [vmem:[#allocation2 + $0x3b] sm:$0xff] }
  0x22   :  { %992 = vmatmul.msk.f32.gmra.mxu3 %vm69_vm0, %v119_v41  ;;  %v109_v46 = vld [vmem:[#allocation2 + $0x11] sm:$0xff]  ;;  %v354_v53 = vld [vmem:[#allocation2 + $0x2] sm:$0xff] }
  0x23   :  { %v121_v48 = vld [vmem:[#allocation2 + $0x71] sm:$0xff]  ;;  %v122_v51 = vld [vmem:[#allocation2 + $0x79] sm:$0xff]  ;;  %v504_v54 = vld [vmem:[#allocation2 + $0x3] sm:$0xff] }
  0x24   :  { %v110_v49 = vld [vmem:[#allocation2 + $0x19] sm:$0xff]  ;;  %v111_v52 = vld [vmem:[#allocation2 + $0x21] sm:$0xff]  ;;  %v355_v56 = vld [vmem:[#allocation2 + $0xa] sm:$0xff] }
  0x25   :  { %981 = vmatmul.msk.f32.gmra.mxu0 %vm69_vm0, %v108_v43  ;;  %v654_v55 = vld [vmem:[#allocation2 + $0x4] sm:$0xff]  ;;  %v655_v58 = vld [vmem:[#allocation2 + $0xc] sm:$0xff]  ;;  %v656_v61 = vld [vmem:[#allocation2 + $0x14] sm:$0xff] }
  0x26   :  { %v505_v57 = vld [vmem:[#allocation2 + $0xb] sm:$0xff]  ;;  %v506_v60 = vld [vmem:[#allocation2 + $0x13] sm:$0xff]  ;;  %v507_v63 = vld [vmem:[#allocation2 + $0x1b] sm:$0xff] }
  0x27   :  { %997 = vmatmul.msk.f32.gmra.mxu1 %vm69_vm0, %v1280_v14  ;;  %v356_v59 = vld [vmem:[#allocation2 + $0x12] sm:$0xff]  ;;  %v357_v62 = vld [vmem:[#allocation2 + $0x1a] sm:$0xff]  ;;  %v358_v1 = vld [vmem:[#allocation2 + $0x22] sm:$0xff] }
  0x28   :  { %988 = vmatmul.msk.f32.gmra.mxu2 %vm69_vm0, %v115_v44  ;;  %v657_v0 = vld [vmem:[#allocation2 + $0x1c] sm:$0xff]  ;;  %v662_v18 = vld [vmem:[#allocation2 + $0x44] sm:$0xff]  ;;  %v663_v20 = vld [vmem:[#allocation2 + $0x4c] sm:$0xff] }
  0x29   :  { %v661_v14 = vld [vmem:[#allocation2 + $0x3c] sm:$0xff]  ;;  %v364_v21 = vld [vmem:[#allocation2 + $0x52] sm:$0xff]  ;;  %v666_v34 = vld [vmem:[#allocation2 + $0x64] sm:$0xff] }
  0x2a   :  { %993 = vmatmul.msk.f32.gmra.mxu3 %vm69_vm0, %v120_v45  ;;  %v362_v16 = vld [vmem:[#allocation2 + $0x42] sm:$0xff]  ;;  %v367_v39 = vld [vmem:[#allocation2 + $0x6a] sm:$0xff] }
  0x2b   :  { %v512_v17 = vld [vmem:[#allocation2 + $0x43] sm:$0xff]  ;;  %v515_v25 = vld [vmem:[#allocation2 + $0x5b] sm:$0xff]  ;;  %v517_v40 = vld [vmem:[#allocation2 + $0x6b] sm:$0xff] }
  0x2c   :  { %v516_v32 = vld [vmem:[#allocation2 + $0x63] sm:$0xff]  ;;  %v667_v42 = vld [vmem:[#allocation2 + $0x6c] sm:$0xff] }
  0x2d   :  { %982 = vmatmul.msk.f32.gmra.mxu0 %vm69_vm0, %v109_v46 }
  0x2f   :  { %998 = vmatmul.msk.f32.gmra.mxu1 %vm69_vm0, %v55_v22  ;;  %v664_v22 = vld [vmem:[#allocation2 + $0x54] sm:$0xff] }
  0x30   :  { %989 = vmatmul.msk.f32.gmra.mxu2 %vm69_vm0, %v116_v47  ;;  %v368_v47 = vld [vmem:[#allocation2 + $0x72] sm:$0xff] }
  0x32   :  { %994 = vmatmul.msk.f32.gmra.mxu3 %vm69_vm0, %v121_v48  ;;  %v518_v48 = vld [vmem:[#allocation2 + $0x73] sm:$0xff] }
  0x35   :  { %983 = vmatmul.msk.f32.gmra.mxu0 %vm69_vm0, %v110_v49 }
  0x37   :  { %999 = vmatmul.msk.f32.gmra.mxu1 %vm69_vm0, %v56_v31  ;;  %v366_v31 = vld [vmem:[#allocation2 + $0x62] sm:$0xff] }
  0x38   :  { %990 = vmatmul.msk.f32.gmra.mxu2 %vm69_vm0, %v117_v50  ;;  %v668_v50 = vld [vmem:[#allocation2 + $0x74] sm:$0xff] }
  0x3a   :  { %995 = vmatmul.msk.f32.gmra.mxu3 %vm69_vm0, %v122_v51 }
  0x3d   :  { %984 = vmatmul.msk.f32.gmra.mxu0 %vm69_vm0, %v111_v52 }
  0x3f   :  { %1000 = vmatmul.msk.f32.gmra.mxu1 %vm69_vm0, %v57_v36 }
  0x40   :  { %1016 = vmatmul.msk.f32.vlgmr.msrb.gmra.mxu2 %vm69_vm0, %v354_v53 }
  0x42   :  { %1036 = vmatmul.msk.f32.vlgmr.msrb.gmra.mxu3 %vm69_vm0, %v504_v54 }
  0x45   :  { %1056 = vmatmul.msk.f32.vlgmr.msrb.gmra.mxu0 %vm69_vm0, %v654_v55  ;;  %v369_v55 = vld [vmem:[#allocation2 + $0x7a] sm:$0xff] }
  0x47   :  { %1001 = vmatmul.msk.f32.gmra.mxu1 %vm69_vm0, %v1220_v2  ;;  %v508_v2 = vld [vmem:[#allocation2 + $0x23] sm:$0xff] }
  0x48   :  { %1017 = vmatmul.msk.f32.gmra.mxu2 %vm69_vm0, %v355_v56  ;;  %v519_v56 = vld [vmem:[#allocation2 + $0x7b] sm:$0xff] }
  0x4a   :  { %1037 = vmatmul.msk.f32.gmra.mxu3 %vm69_vm0, %v505_v57 }
  0x4d   :  { %1057 = vmatmul.msk.f32.gmra.mxu0 %vm69_vm0, %v655_v58  ;;  %v669_v58 = vld [vmem:[#allocation2 + $0x7c] sm:$0xff] }
  0x4f   :  { %1002 = vmatmul.msk.f32.gmra.mxu1 %vm69_vm0, %v1225_v3  ;;  %v658_v3 = vld [vmem:[#allocation2 + $0x24] sm:$0xff] }
  0x50   :  { %1018 = vmatmul.msk.f32.gmra.mxu2 %vm69_vm0, %v356_v59 }
  0x52   :  { %1038 = vmatmul.msk.f32.gmra.mxu3 %vm69_vm0, %v506_v60 }
  0x55   :  { %1058 = vmatmul.msk.f32.gmra.mxu0 %vm69_vm0, %v656_v61 }
  0x57   :  { %1003 = vmatmul.msk.f32.gmra.mxu1 %vm69_vm0, %v1235_v5  ;;  %v509_v5 = vld [vmem:[#allocation2 + $0x2b] sm:$0xff] }
  0x58   :  { %1019 = vmatmul.msk.f32.gmra.mxu2 %vm69_vm0, %v357_v62 }
  0x5a   :  { %1039 = vmatmul.msk.f32.gmra.mxu3 %vm69_vm0, %v507_v63 }
  0x5d   :  { %1059 = vmatmul.msk.f32.gmra.mxu0 %vm69_vm0, %v657_v0  ;;  %v909_v0 = vld [vmem:[#allocation6 + $0x78] sm:$0xff] }
  0x5e   :  { %937 = vmatpush.msra.mxu1 %v909_v0 }
  0x5f   :  { %1004 = vmatmul.msk.f32.gmra.mxu1 %vm69_vm0, %v1262_v10  ;;  %v510_v10 = vld [vmem:[#allocation2 + $0x33] sm:$0xff] }
  0x60   :  { %1020 = vmatmul.msk.f32.gmra.mxu2 %vm69_vm0, %v358_v1  ;;  %v908_v1 = vld [vmem:[#allocation6 + $0x70] sm:$0xff] }
  0x61   :  { %938 = vmatpush.msra.mxu1 %v908_v1 }
  0x62   :  { %1040 = vmatmul.msk.f32.gmra.mxu3 %vm69_vm0, %v508_v2 }
  0x65   :  { %1060 = vmatmul.msk.f32.gmra.mxu0 %vm69_vm0, %v658_v3 }
  0x67   :  { %1005 = vmatmul.msk.f32.gmra.mxu1 %vm69_vm0, %v1303_v19  ;;  %v363_v19 = vld [vmem:[#allocation2 + $0x4a] sm:$0xff] }
  0x68   :  { %1021 = vmatmul.msk.f32.gmra.mxu2 %vm69_vm0, %v359_v4 }
  0x6a   :  { %1041 = vmatmul.msk.f32.gmra.mxu3 %vm69_vm0, %v509_v5 }
  0x6d   :  { %1061 = vmatmul.msk.f32.gmra.mxu0 %vm69_vm0, %v659_v8 }
  0x6f   :  { %1006 = vmatmul.msk.f32.gmra.mxu1 %vm69_vm0, %v1338_v29 }
  0x70   :  { %1022 = vmatmul.msk.f32.gmra.mxu2 %vm69_vm0, %v360_v9 }
  0x72   :  { %1042 = vmatmul.msk.f32.gmra.mxu3 %vm69_vm0, %v510_v10 }
  0x75   :  { %1062 = vmatmul.msk.f32.gmra.mxu0 %vm69_vm0, %v660_v11 }
  0x77   :  { %1007 = vmatmul.msk.f32.gmra.mxu1 %vm69_vm0, %v1242_v6  ;;  %v513_v6 = vld [vmem:[#allocation2 + $0x4b] sm:$0xff] }
  0x78   :  { %1023 = vmatmul.msk.f32.gmra.mxu2 %vm69_vm0, %v361_v12 }
  0x7a   :  { %1043 = vmatmul.msk.f32.gmra.mxu3 %vm69_vm0, %v511_v13 }
  0x7d   :  { %1063 = vmatmul.msk.f32.gmra.mxu0 %vm69_vm0, %v661_v14 }
  0x7f   :  { %1008 = vmatmul.msk.f32.gmra.mxu1 %vm69_vm0, %v1247_v7  ;;  %v514_v7 = vld [vmem:[#allocation2 + $0x53] sm:$0xff] }
  0x80   :  { %1024 = vmatmul.msk.f32.gmra.mxu2 %vm69_vm0, %v362_v16  ;;  %v1491_v16 = vld [vmem:[#allocation3] sm:$0xff] }
  0x82   :  { %1044 = vmatmul.msk.f32.gmra.mxu3 %vm69_vm0, %v512_v17 }
  0x85   :  { %1064 = vmatmul.msk.f32.gmra.mxu0 %vm69_vm0, %v662_v18 }
  0x87   :  { %1009 = vmatmul.msk.f32.gmra.mxu1 %vm69_vm0, %v1287_v15  ;;  %v365_v15 = vld [vmem:[#allocation2 + $0x5a] sm:$0xff] }
  0x88   :  { %1025 = vmatmul.msk.f32.gmra.mxu2 %vm69_vm0, %v363_v19 }
  0x8a   :  { %1045 = vmatmul.msk.f32.gmra.mxu3 %vm69_vm0, %v513_v6  ;;  %v1496_v6 = vld [vmem:[#allocation3 + $0x8] sm:$0xff] }
  0x8d   :  { %1065 = vmatmul.msk.f32.gmra.mxu0 %vm69_vm0, %v663_v20 }
  0x8f   :  { %1010 = vmatmul.msk.f32.gmra.mxu1 %vm69_vm0, %v1321_v24 }
  0x90   :  { %1026 = vmatmul.msk.f32.gmra.mxu2 %vm69_vm0, %v364_v21 }
  0x92   :  { %1046 = vmatmul.msk.f32.gmra.mxu3 %vm69_vm0, %v514_v7 }
  0x94   :  { %v1450_v23 = vpop.f32.mrf.mxu1 }
  0x95   :  { %1066 = vmatmul.msk.f32.gmra.mxu0 %vm69_vm0, %v664_v22 }
  0x97   :  { %1011 = vmatmul.msk.f32.gmra.mxu1 %vm69_vm0, %v1353_v33 }
  0x98   :  { %1027 = vmatmul.msk.f32.gmra.mxu2 %vm69_vm0, %v365_v15 }
  0x9a   :  { %1047 = vmatmul.msk.f32.gmra.mxu3 %vm69_vm0, %v515_v25  ;;  %v193_v24 = vpop.f32.mrf.mxu0 }
  0x9b   :  { %v1457_v27 = vpop.f32.mrf.mxu2 }
  0x9c   :  { %v306_v28 = vpop.f32.mrf.mxu1 }
  0x9d   :  { %v1459_v29 = vpop.f32.mrf.mxu3  ;;  %v307_v30 = vadd.f32 %v306_v28, %v193_v24  ;;  %1067 = vmatmul.msk.f32.gmra.mxu0 %vm69_vm0, %v665_v26  ;;  %v907_v26 = vld [vmem:[#allocation6 + $0x68] sm:$0xff]  ;;  %v906_v28 = vld [vmem:[#allocation6 + $0x60] sm:$0xff] }
  0x9e   :  { %939 = vmatpush.msra.mxu1 %v907_v26 }
  0xa0   :  { %1028 = vmatmul.msk.f32.gmra.mxu2 %vm69_vm0, %v366_v31  ;;  %940 = vmatpush.msra.mxu1 %v906_v28 }
  0xa2   :  { %1048 = vmatmul.msk.f32.gmra.mxu3 %vm69_vm0, %v516_v32  ;;  %v196_v33 = vpop.f32.mrf.mxu0 }
  0xa3   :  { %v1464_v35 = vpop.f32.mrf.mxu2 }
  0xa4   :  { %v309_v36 = vpop.f32.mrf.mxu1 }
  0xa5   :  { %v1466_v37 = vpop.f32.mrf.mxu3  ;;  %v310_v38 = vadd.f32 %v309_v36, %v196_v33  ;;  %1068 = vmatmul.msk.f32.gmra.mxu0 %vm69_vm0, %v666_v34 }
  0xa8   :  { %1029 = vmatmul.msk.f32.gmra.mxu2 %vm69_vm0, %v367_v39 }
  0xaa   :  { %1049 = vmatmul.msk.f32.gmra.mxu3 %vm69_vm0, %v517_v40  ;;  %v199_v41 = vpop.f32.mrf.mxu0 }
  0xab   :  { %v1471_v43 = vpop.f32.mrf.mxu2 }
  0xac   :  { %v312_v44 = vpop.f32.mrf.mxu1 }
  0xad   :  { %v1473_v45 = vpop.f32.mrf.mxu3  ;;  %v313_v46 = vadd.f32 %v312_v44, %v199_v41  ;;  %1069 = vmatmul.msk.f32.gmra.mxu0 %vm69_vm0, %v667_v42 }
  0xb0   :  { %1030 = vmatmul.msk.f32.gmra.mxu2 %vm69_vm0, %v368_v47 }
  0xb2   :  { %1050 = vmatmul.msk.f32.gmra.mxu3 %vm69_vm0, %v518_v48  ;;  %v202_v49 = vpop.f32.mrf.mxu0  ;;  %v905_v48 = vld [vmem:[#allocation6 + $0x58] sm:$0xff] }
  0xb3   :  { %v1478_v51 = vpop.f32.mrf.mxu2  ;;  %941 = vmatpush.msra.mxu1 %v905_v48 }
  0xb4   :  { %v315_v52 = vpop.f32.mrf.mxu1 }
  0xb5   :  { %v1480_v53 = vpop.f32.mrf.mxu3  ;;  %v316_v54 = vadd.f32 %v315_v52, %v202_v49  ;;  %1070 = vmatmul.msk.f32.gmra.mxu0 %vm69_vm0, %v668_v50  ;;  %v904_v49 = vld [vmem:[#allocation6 + $0x50] sm:$0xff] }
  0xb6   :  { %942 = vmatpush.msra.mxu1 %v904_v49 }
  0xb8   :  { %1031 = vmatmul.msk.f32.gmra.mxu2 %vm69_vm0, %v369_v55 }
  0xba   :  { %1051 = vmatmul.msk.f32.gmra.mxu3 %vm69_vm0, %v519_v56  ;;  %v205_v57 = vpop.f32.mrf.mxu0 }
  0xbb   :  { %v1485_v59 = vpop.f32.mrf.mxu2 }
  0xbc   :  { %v318_v60 = vpop.f32.mrf.mxu1 }
  0xbd   :  { %v1487_v61 = vpop.f32.mrf.mxu3  ;;  %v319_v62 = vadd.f32 %v318_v60, %v205_v57  ;;  %1071 = vmatmul.msk.f32.gmra.mxu0 %vm69_vm0, %v669_v58 }
  0xc2   :  { %v740_v63 = vpop.f32.mrf.mxu0 }
  0xc3   :  { %v440_v2 = vpop.f32.mrf.mxu2 }
  0xc4   :  { %v488_v3 = vadd.f32 %v440_v2, %v307_v30  ;;  %v321_v4 = vpop.f32.mrf.mxu1 }
  0xc5   :  { %v322_v5 = vadd.f32 %v321_v4, %v1450_v23  ;;  %v590_v8 = vpop.f32.mrf.mxu3 }
  0xc6   :  { %v638_v9 = vadd.f32 %v590_v8, %v488_v3 }
  0xc8   :  { %v788_v10 = vadd.f32 %v740_v63, %v638_v9 }
  0xca   :  { %v743_v11 = vpop.f32.mrf.mxu0  ;;  %v806_v20 = vadd.f32 %v1491_v16, %v788_v10 }
  0xcb   :  { %v443_v12 = vpop.f32.mrf.mxu2 }
  0xcc   :  { %v489_v13 = vadd.f32 %v443_v12, %v310_v38  ;;  %v324_v14 = vpop.f32.mrf.mxu1  ;;  %v822_v15 = vmax.f32 %v806_v20, 0.0 }
  0xcd   :  { %v1494_v17 = vadd.f32 %v324_v14, %v1457_v27  ;;  %v593_v18 = vpop.f32.mrf.mxu3 }
  0xce   :  { %v639_v19 = vadd.f32 %v593_v18, %v489_v13 }
  0xd0   :  { %v789_v21 = vadd.f32 %v743_v11, %v639_v19 }
  0xd2   :  { %v807_v7 = vadd.f32 %v1496_v6, %v789_v21  ;;  %v746_v22 = vpop.f32.mrf.mxu0 }
  0xd3   :  { %v446_v23 = vpop.f32.mrf.mxu2 }
  0xd4   :  { %v823_v25 = vmax.f32 %v807_v7, 0.0  ;;  %v490_v24 = vadd.f32 %v446_v23, %v313_v46  ;;  %v327_v63 = vpop.f32.mrf.mxu1 }
  0xd5   :  { %v596_v30 = vpop.f32.mrf.mxu3 }
  0xd6   :  { %v838_v27 = vmax.f32 %v822_v15, %v823_v25  ;;  %v640_v31 = vadd.f32 %v596_v30, %v490_v24  ;;  %v903_v15 = vld [vmem:[#allocation6 + $0x48] sm:$0xff]  ;;  %v902_v25 = vld [vmem:[#allocation6 + $0x40] sm:$0xff] }
  0xd7   :  { %943 = vmatpush.msra.mxu1 %v903_v15 }
  0xd8   :  { %v790_v32 = vadd.f32 %v746_v22, %v640_v31  ;;  %v839_v39 = vrot.slane %v838_v27, 4 }
  0xd9   :  { %944 = vmatpush.msra.mxu1 %v902_v25 }
  0xda   :  { %v749_v33 = vpop.f32.mrf.mxu0  ;;  %v808_v41 = vadd.f32 %v1491_v16, %v790_v32  ;;  %v840_v44 = vmax.f32 %v838_v27, %v839_v39 }
  0xdb   :  { %v449_v34 = vpop.f32.mrf.mxu2 }
  0xdc   :  { %v491_v36 = vadd.f32 %v449_v34, %v316_v54  ;;  %v824_v52 = vmax.f32 %v808_v41, 0.0  ;;  %v841_v54 = vrot.slane %v840_v44, 2  ;;  %v330_v20 = vpop.f32.mrf.mxu1 }
  0xdd   :  { %v599_v38 = vpop.f32.mrf.mxu3 }
  0xde   :  { %v641_v40 = vadd.f32 %v599_v38, %v491_v36  ;;  %v842_v2 = vmax.f32 %v840_v44, %v841_v54  ;;  %v328_v36 = vadd.f32 %v327_v63, %v1464_v35  ;;  %v900_v54 = vld [vmem:[#allocation6 + $0x30] sm:$0xff] }
  0xe0   :  { %v791_v42 = vadd.f32 %v749_v33, %v641_v40  ;;  %v843_v12 = vrot.slane %v842_v2, 1 }
  0xe2   :  { %v809_v46 = vadd.f32 %v1496_v6, %v791_v42  ;;  %v752_v47 = vpop.f32.mrf.mxu0  ;;  %v844_v21 = vmax.f32 %v842_v2, %v843_v12 }
  0xe3   :  { %v452_v50 = vpop.f32.mrf.mxu2 }
  0xe4   :  { %v825_v55 = vmax.f32 %v809_v46, 0.0  ;;  %v492_v56 = vadd.f32 %v452_v50, %v319_v62  ;;  %v333_v40 = vpop.f32.mrf.mxu1 }
  0xe5   :  { %v602_v57 = vpop.f32.mrf.mxu3 }
  0xe6   :  { %v845_v58 = vmax.f32 %v824_v52, %v825_v55  ;;  %v642_v60 = vadd.f32 %v602_v57, %v492_v56  ;;  %v331_v52 = vadd.f32 %v330_v20, %v1471_v43  ;;  %v901_v57 = vld [vmem:[#allocation6 + $0x38] sm:$0xff]  ;;  %v334_v43 = vadd.f32 %v333_v40, %v1478_v51 }
  0xe7   :  { %945 = vmatpush.msra.mxu1 %v901_v57 }
  0xe8   :  { %v846_v0 = vrot.slane %v845_v58, 4  ;;  %v792_v1 = vadd.f32 %v752_v47, %v642_v60 }
  0xe9   :  { %946 = vmatpush.msra.mxu1 %v900_v54 }
  0xea   :  { %v847_v3 = vmax.f32 %v845_v58, %v846_v0  ;;  %v755_v4 = vpop.f32.mrf.mxu0  ;;  %v810_v62 = vadd.f32 %v1491_v16, %v792_v1 }
  0xeb   :  { %v455_v8 = vpop.f32.mrf.mxu2 }
  0xec   :  { %v848_v9 = vrot.slane %v847_v3, 2  ;;  %v493_v10 = vadd.f32 %v455_v8, %v322_v5  ;;  %v826_v26 = vmax.f32 %v810_v62, 0.0  ;;  %v336_v2 = vpop.f32.mrf.mxu1 }
  0xed   :  { %v605_v11 = vpop.f32.mrf.mxu3  ;;  %v337_v15 = vadd.f32 %v336_v2, %v1485_v59 }
  0xee   :  { %v849_v13 = vmax.f32 %v847_v3, %v848_v9  ;;  %v643_v14 = vadd.f32 %v605_v11, %v493_v10 }
  0xf0   :  { %v850_v18 = vrot.slane %v849_v13, 1  ;;  %v793_v19 = vadd.f32 %v755_v4, %v643_v14 }
  0xf2   :  { %v851_v7 = vmax.f32 %v849_v13, %v850_v18  ;;  %v811_v22 = vadd.f32 %v1496_v6, %v793_v19  ;;  %v758_v23 = vpop.f32.mrf.mxu0 }
  0xf3   :  { %v458_v24 = vpop.f32.mrf.mxu2 }
  0xf4   :  { %v923_v5 = vsel %vm922_vm1, %v851_v7, %v844_v21  ;;  %v827_v28 = vmax.f32 %v811_v22, 0.0  ;;  %v494_v30 = vadd.f32 %v458_v24, %v1494_v17  ;;  %v339_v21 = vpop.f32.mrf.mxu1 }
  0xf5   :  { %v608_v27 = vpop.f32.mrf.mxu3  ;;  %v340_v59 = vadd.f32 %v339_v21, %v1459_v29 }
  0xf6   :  { %v852_v31 = vmax.f32 %v826_v26, %v827_v28  ;;  %v644_v32 = vadd.f32 %v608_v27, %v494_v30  ;;  %v898_v26 = vld [vmem:[#allocation6 + $0x20] sm:$0xff] }
  0xf8   :  { %v853_v33 = vrot.slane %v852_v31, 4  ;;  %v794_v34 = vadd.f32 %v758_v23, %v644_v32 }
  0xfa   :  { %v854_v38 = vmax.f32 %v852_v31, %v853_v33  ;;  %v761_v39 = vpop.f32.mrf.mxu0  ;;  %v812_v17 = vadd.f32 %v1491_v16, %v794_v34 }
  0xfb   :  { %v461_v41 = vpop.f32.mrf.mxu2 }
  0xfc   :  { %v855_v42 = vrot.slane %v854_v38, 2  ;;  %v495_v44 = vadd.f32 %v461_v41, %v328_v36  ;;  %v828_v60 = vmax.f32 %v812_v17, 0.0 }
  0xfd   :  { %v611_v46 = vpop.f32.mrf.mxu3 }
  0xfe   :  { %v856_v47 = vmax.f32 %v854_v38, %v855_v42  ;;  %v645_v48 = vadd.f32 %v611_v46, %v495_v44 }
 0x100   :  { %v857_v49 = vrot.slane %v856_v47, 1  ;;  %v795_v50 = vadd.f32 %v761_v39, %v645_v48  ;;  %v342_v39 = vpop.f32.mrf.mxu1 }
 0x102   :  { %v858_v55 = vmax.f32 %v856_v47, %v857_v49  ;;  %v813_v56 = vadd.f32 %v1496_v6, %v795_v50  ;;  %v764_v35 = vpop.f32.mrf.mxu0 }
 0x103   :  { %v464_v58 = vpop.f32.mrf.mxu2 }
 0x104   :  { %v829_v63 = vmax.f32 %v813_v56, 0.0  ;;  %v496_v0 = vadd.f32 %v464_v58, %v331_v52  ;;  %v925_v1 = vsel %vm924_vm2, %v858_v55, %v923_v5  ;;  %v899_v5 = vld [vmem:[#allocation6 + $0x28] sm:$0xff]  ;;  %v897_v56 = vld [vmem:[#allocation6 + $0x18] sm:$0xff]  ;;  %v343_v58 = vadd.f32 %v342_v39, %v1466_v37 }
 0x105   :  { %v614_v3 = vpop.f32.mrf.mxu3  ;;  %947 = vmatpush.msra.mxu1 %v899_v5 }
 0x106   :  { %v859_v4 = vmax.f32 %v828_v60, %v829_v63  ;;  %v646_v9 = vadd.f32 %v614_v3, %v496_v0 }
 0x107   :  { %948 = vmatpush.msra.mxu1 %v898_v26 }
 0x108   :  { %v860_v8 = vrot.slane %v859_v4, 4  ;;  %v796_v14 = vadd.f32 %v764_v35, %v646_v9  ;;  %v896_v35 = vld [vmem:[#allocation6 + $0x10] sm:$0xff]  ;;  %v345_v60 = vpop.f32.mrf.mxu1 }
 0x109   :  { %949 = vmatpush.msra.mxu1 %v897_v56 }
 0x10a   :  { %v861_v10 = vmax.f32 %v859_v4, %v860_v8  ;;  %v767_v11 = vpop.f32.mrf.mxu0  ;;  %v814_v22 = vadd.f32 %v1491_v16, %v796_v14 }
 0x10b   :  { %v467_v12 = vpop.f32.mrf.mxu2  ;;  %950 = vmatpush.msra.mxu1 %v896_v35 }
 0x10c   :  { %v862_v13 = vrot.slane %v861_v10, 2  ;;  %v497_v18 = vadd.f32 %v467_v12, %v334_v43  ;;  %v830_v30 = vmax.f32 %v814_v22, 0.0  ;;  %v894_v22 = vld [vmem:[#allocation6] sm:$0xff] }
 0x10d   :  { %v617_v62 = vpop.f32.mrf.mxu3 }
 0x10e   :  { %v863_v19 = vmax.f32 %v861_v10, %v862_v13  ;;  %v647_v20 = vadd.f32 %v617_v62, %v497_v18  ;;  %v346_v10 = vadd.f32 %v345_v60, %v1473_v45 }
 0x110   :  { %v864_v7 = vrot.slane %v863_v19, 1  ;;  %v797_v23 = vadd.f32 %v767_v11, %v647_v20  ;;  %v348_v62 = vpop.f32.mrf.mxu1 }
 0x111   :  { %v349_v45 = vadd.f32 %v348_v62, %v1480_v53 }
 0x112   :  { %v865_v25 = vmax.f32 %v863_v19, %v864_v7  ;;  %v815_v51 = vadd.f32 %v1496_v6, %v797_v23  ;;  %v770_v24 = vpop.f32.mrf.mxu0  ;;  %v895_v7 = vld [vmem:[#allocation6 + $0x8] sm:$0xff] }
 0x113   :  { %v470_v28 = vpop.f32.mrf.mxu2  ;;  %951 = vmatpush.msra.mxu1 %v895_v7 }
 0x114   :  { %v831_v27 = vmax.f32 %v815_v51, 0.0  ;;  %v498_v31 = vadd.f32 %v470_v28, %v337_v15  ;;  %v927_v32 = vsel %vm926_vm3, %v865_v25, %v925_v1 }
 0x115   :  { %v620_v33 = vpop.f32.mrf.mxu3  ;;  %952 = vmatpush.msra.mxu1 %v894_v22 }
 0x116   :  { %v866_v34 = vmax.f32 %v830_v30, %v831_v27  ;;  %v648_v38 = vadd.f32 %v620_v33, %v498_v31 }
 0x118   :  { %v867_v36 = vrot.slane %v866_v34, 4  ;;  %v798_v46 = vadd.f32 %v770_v24, %v648_v38  ;;  %v351_v33 = vpop.f32.mrf.mxu1 }
 0x119   :  { %v352_v38 = vadd.f32 %v351_v33, %v1487_v61 }
 0x11a   :  { %v868_v40 = vmax.f32 %v866_v34, %v867_v36  ;;  %v773_v41 = vpop.f32.mrf.mxu0  ;;  %v816_v52 = vadd.f32 %v1491_v16, %v798_v46 }
 0x11b   :  { %v473_v42 = vpop.f32.mrf.mxu2 }
 0x11c   :  { %v869_v44 = vrot.slane %v868_v40, 2  ;;  %v499_v47 = vadd.f32 %v473_v42, %v340_v59  ;;  %v832_v0 = vmax.f32 %v816_v52, 0.0 }
 0x11d   :  { %v623_v48 = vpop.f32.mrf.mxu3 }
 0x11e   :  { %v870_v49 = vmax.f32 %v868_v40, %v869_v44  ;;  %v649_v17 = vadd.f32 %v623_v48, %v499_v47 }
 0x120   :  { %v871_v50 = vrot.slane %v870_v49, 1  ;;  %v799_v55 = vadd.f32 %v773_v41, %v649_v17 }
 0x122   :  { %v872_v57 = vmax.f32 %v870_v49, %v871_v50  ;;  %v817_v29 = vadd.f32 %v1496_v6, %v799_v55  ;;  %v776_v54 = vpop.f32.mrf.mxu0 }
 0x123   :  { %v476_v63 = vpop.f32.mrf.mxu2 }
 0x124   :  { %v833_v1 = vmax.f32 %v817_v29, 0.0  ;;  %v929_v2 = vsel %vm928_vm4, %v872_v57, %v927_v32  ;;  %v500_v3 = vadd.f32 %v476_v63, %v343_v58 }
 0x125   :  { %v626_v4 = vpop.f32.mrf.mxu3 }
 0x126   :  { %v873_v8 = vmax.f32 %v832_v0, %v833_v1  ;;  %v650_v43 = vadd.f32 %v626_v4, %v500_v3 }
 0x128   :  { %v874_v9 = vrot.slane %v873_v8, 4  ;;  %v800_v37 = vadd.f32 %v776_v54, %v650_v43 }
 0x12a   :  { %v875_v11 = vmax.f32 %v873_v8, %v874_v9  ;;  %v779_v12 = vpop.f32.mrf.mxu0  ;;  %v818_v25 = vadd.f32 %v1491_v16, %v800_v37 }
 0x12b   :  { %v479_v13 = vpop.f32.mrf.mxu2 }
 0x12c   :  { %v876_v14 = vrot.slane %v875_v11, 2  ;;  %v501_v18 = vadd.f32 %v479_v13, %v346_v10  ;;  %v834_v31 = vmax.f32 %v818_v25, 0.0 }
 0x12d   :  { %v629_v19 = vpop.f32.mrf.mxu3 }
 0x12e   :  { %v877_v20 = vmax.f32 %v875_v11, %v876_v14  ;;  %v651_v21 = vadd.f32 %v629_v19, %v501_v18 }
 0x130   :  { %v878_v23 = vrot.slane %v877_v20, 1  ;;  %v801_v15 = vadd.f32 %v779_v12, %v651_v21 }
 0x132   :  { %v879_v51 = vmax.f32 %v877_v20, %v878_v23  ;;  %v819_v24 = vadd.f32 %v1496_v6, %v801_v15  ;;  %v782_v26 = vpop.f32.mrf.mxu0 }
 0x133   :  { %v482_v5 = vpop.f32.mrf.mxu2 }
 0x134   :  { %v835_v28 = vmax.f32 %v819_v24, 0.0  ;;  %v502_v30 = vadd.f32 %v482_v5, %v349_v45  ;;  %v931_v27 = vsel %vm930_vm5, %v879_v51, %v929_v2 }
 0x135   :  { %v632_v32 = vpop.f32.mrf.mxu3 }
 0x136   :  { %v880_v34 = vmax.f32 %v834_v31, %v835_v28  ;;  %v652_v36 = vadd.f32 %v632_v32, %v502_v30 }
 0x138   :  { %v881_v39 = vrot.slane %v880_v34, 4  ;;  %v802_v40 = vadd.f32 %v782_v26, %v652_v36 }
 0x13a   :  { %v785_v42 = vpop.f32.mrf.mxu0  ;;  %v882_v46 = vmax.f32 %v880_v34, %v881_v39  ;;  %v820_v47 = vadd.f32 %v1491_v16, %v802_v40 }
 0x13b   :  { %v485_v59 = vpop.f32.mrf.mxu2 }
 0x13c   :  { %v503_v41 = vadd.f32 %v485_v59, %v352_v38  ;;  %v883_v17 = vrot.slane %v882_v46, 2  ;;  %v836_v50 = vmax.f32 %v820_v47, 0.0 }
 0x13d   :  { %v635_v53 = vpop.f32.mrf.mxu3 }
 0x13e   :  { %v653_v44 = vadd.f32 %v635_v53, %v503_v41  ;;  %v884_v56 = vmax.f32 %v882_v46, %v883_v17 }
 0x140   :  { %v803_v48 = vadd.f32 %v785_v42, %v653_v44  ;;  %v885_v57 = vrot.slane %v884_v56, 1 }
 0x142   :  { %v821_v49 = vadd.f32 %v1496_v6, %v803_v48  ;;  %v886_v58 = vmax.f32 %v884_v56, %v885_v57  ;;  %v1090_v6 = vld [vmem:[%s1534_s4] ss:$0 sm:$0xff] }
 0x144   :  { %v837_v52 = vmax.f32 %v821_v49, 0.0  ;;  %v933_v0 = vsel %vm932_vm6, %v886_v58, %v931_v27 }
 0x146   :  { %v887_v55 = vmax.f32 %v836_v50, %v837_v52 }
 0x148   :  { %v888_v35 = vrot.slane %v887_v55, 4 }
 0x14a   :  { %v889_v61 = vmax.f32 %v887_v55, %v888_v35 }
 0x14c   :  { %v890_v29 = vrot.slane %v889_v61, 2 }
 0x14e   :  { %v891_v54 = vmax.f32 %v889_v61, %v890_v29 }
 0x150   :  { %v892_v60 = vrot.slane %v891_v54, 1 }
 0x152   :  { %v893_v63 = vmax.f32 %v891_v54, %v892_v60 }
 0x154   :  { %v935_v16 = vsel %vm934_vm7, %v893_v63, %v933_v0 }
 0x155   :  { %953 = vmatmul.f32.vlgmr.msra.gmra.mxu1 %v935_v16 }
 0x1d2   :  { %v954_v1 = vpop.f32.mrf.mxu1 }
 0x1d3   :  { %v955_v2 = vadd.f32 %v1090_v6, %v954_v1 }
 0x1d5   :  { %957 = vst [vmem:[#allocation8] sm:$0xff] %v955_v2 }
 0x1d6   :  { %968 = dma.vmem_to_hbm [thread:$0]  %s964_s22, 128, %s966_s25, [#allocation5]  }
 0x1d7   :  { %1167 = dma.done.wait [#allocation5], 128  }
 0x1d8   :  { %1168 = vsyncadd [#allocation5], 4294967168 }
 0x1d9   :  { %973 = vsyncpa [#allocation4], 1 }
 0x1da   :  { %974 = vsyncpa [#allocation7], 1 }
 0x1db   :  { %975 = vsyncpa [#allocation5], 1 }

</bundles_post_ra>
